<compile_context>
chip_gen: v7x
topology: tpu7x:2x2x1
jax: 0.10.0
libtpu: 0.0.40
codegen_flags: <defaults>
</compile_context>

<pallas_src>
import jax
import jax.numpy as jnp
from jax import lax
from jax.experimental import pallas as pl
from jax.experimental.pallas import tpu as pltpu


def _round_up(n, m):
    return ((n + m - 1) // m) * m


def _mlp_kernel(x_ref, w1_ref, b1_ref, w2_ref, b2_ref, out_ref):
    # x_ref:  [TB, D_in]   w1_ref: [H1, D_in]  b1_ref: [H1, 1]
    # w2_ref: [O,  H1]     b2_ref: [O, 1]      out_ref: [O, TB]
    x = x_ref[...]

    # Layer 1, emitted transposed: h_t = W1 @ x.T  -> [H1, TB].
    # Contracts the last axis of both operands (MXU-native, no transposes),
    # and puts the large batch on the lane axis so the bias add + ReLU run
    # lane-dense instead of at 32/128 lane occupancy.
    h_t = lax.dot_general(
        w1_ref[...], x,
        dimension_numbers=(((1,), (1,)), ((), ())),
        preferred_element_type=jnp.float32)
    h_t = jnp.maximum(h_t + b1_ref[...], 0.0)            # [H1, TB], f32

    # Layer 2: u_t = W2 @ h_t + b2 -> [O, TB]; already in the output layout.
    u_t = lax.dot_general(
        w2_ref[...], h_t,
        dimension_numbers=(((1,), (0,)), ((), ())),
        preferred_element_type=jnp.float32)
    out_ref[...] = (u_t + b2_ref[...]).astype(out_ref.dtype)


def two_layer_net(x, w1, b1, w2, b2, *, tb=4096):
    """Fused TwoLayerNet forward.

    x:  [B, D_in]    w1: [H1, D_in]  b1: [H1]
    w2: [O, H1]      b2: [O]
    returns u: [B, O]
    """
    B, D_in = x.shape
    H1 = w1.shape[0]
    O = w2.shape[0]

    # ---- tile selection -----------------------------------------------------
    # Cap the tile so the double-buffered, lane-padded (tb, D_in) x block stays
    # well inside v7x's 32 MiB scoped-VMEM default (tb*128*4 bytes per buffer).
    tb_cap = max(128, min(int(tb), 8192) // 128 * 128)
    if B < 256:
        # Too small to split across two cores: one block, batch padded to a
        # sublane multiple.
        tb_eff = _round_up(B, 8)
        B_pad = tb_eff
    else:
        # Lane-multiple tile; keep the grid >= 2 steps so v7x megacore can
        # shard the batch across both TensorCores.
        half = _round_up(pl.cdiv(B, 2), 128)
        tb_eff = min(tb_cap, half)
        B_pad = _round_up(B, tb_eff)
    grid = (B_pad // tb_eff,)

    # Pad the batch instead of collapsing the grid to one giant block.
    x_in = x if B_pad == B else jnp.pad(x, ((0, B_pad - B), (0, 0)))

    b1_2d = b1.reshape(H1, 1)   # broadcasts over batch columns (lanes)
    b2_2d = b2.reshape(O, 1)    # broadcasts over batch columns (lanes)

    cost = pl.CostEstimate(
        flops=2 * B_pad * D_in * H1 + 2 * B_pad * H1 * O,
        transcendentals=0,
        bytes_accessed=4 * (B_pad * D_in + B_pad * O
                            + H1 * D_in + H1 + O * H1 + O))

    out_t = pl.pallas_call(
        _mlp_kernel,
        out_shape=jax.ShapeDtypeStruct((O, B_pad), x.dtype),
        grid_spec=pl.GridSpec(
            grid=grid,
            in_specs=[
                pl.BlockSpec((tb_eff, D_in), lambda i: (i, 0)),   # streamed x
                pl.BlockSpec((H1, D_in),     lambda i: (0, 0)),   # resident W1
                pl.BlockSpec((H1, 1),        lambda i: (0, 0)),   # resident b1
                pl.BlockSpec((O, H1),        lambda i: (0, 0)),   # resident W2
                pl.BlockSpec((O, 1),         lambda i: (0, 0)),   # resident b2
            ],
            out_specs=pl.BlockSpec((O, tb_eff), lambda i: (0, i)),  # lane-dense
        ),
        compiler_params=pltpu.CompilerParams(
            dimension_semantics=("parallel",),      # megacore-shard the batch
            vmem_limit_bytes=32 * 1024 * 1024),     # explicit; safe on all gens
        cost_estimate=cost,
    )(x_in, w1, b1_2d, w2, b2_2d)

    return out_t[:, :B].T   # cheap [O, B] -> [B, O] glue in the wrapper


if __name__ == "__main__":
    D_in, H1, O = 32, 32, 2

    key = jax.random.PRNGKey(0)
    kx, kw1, kb1, kw2, kb2, kx2, kx3 = jax.random.split(key, 7)

    # Deterministic params mimicking torch.nn.Linear init (uniform ±1/sqrt(fan_in)).
    lim1 = 1.0 / (D_in ** 0.5)
    lim2 = 1.0 / (H1 ** 0.5)
    w1 = jax.random.uniform(kw1, (H1, D_in), jnp.float32, -lim1, lim1)
    b1 = jax.random.uniform(kb1, (H1,), jnp.float32, -lim1, lim1)
    w2 = jax.random.uniform(kw2, (O, H1), jnp.float32, -lim2, lim2)
    b2 = jax.random.uniform(kb2, (O,), jnp.float32, -lim2, lim2)

    def ref(xv):
        h = jnp.maximum(xv @ w1.T + b1, 0.0)
        return h @ w2.T + b2

    # Small shape consistent with the module (batch=8, D_in=H1=32).
    x_small = jax.random.normal(kx, (8, D_in), jnp.float32)
    u_small = jax.block_until_ready(two_layer_net(x_small, w1, b1, w2, b2))
    assert u_small.shape == (8, O)
    assert jnp.allclose(u_small, ref(x_small), atol=1e-5, rtol=1e-5)

    # Larger batch: exercises the multi-step, megacore-parallel grid path.
    x_big = jax.random.normal(kx2, (1024, D_in), jnp.float32)
    u_big = jax.block_until_ready(two_layer_net(x_big, w1, b1, w2, b2))
    assert u_big.shape == (1024, O)
    assert jnp.allclose(u_big, ref(x_big), atol=1e-4, rtol=1e-4)

    # Ragged batch: exercises the pad-and-slice path (no VMEM-busting fallback).
    x_rag = jax.random.normal(kx3, (1000, D_in), jnp.float32)
    u_rag = jax.block_until_ready(two_layer_net(x_rag, w1, b1, w2, b2))
    assert u_rag.shape == (1000, O)
    assert jnp.allclose(u_rag, ref(x_rag), atol=1e-4, rtol=1e-4)

    print("KERNEL_OK")
</pallas_src>

<mosaic_0001>
module attributes {stable_mosaic.version = 11 : i64} {
  func.func @_mlp_kernel(%arg0: i32, %arg1: memref<8x32xf32, #tpu.memory_space<vmem>>, %arg2: memref<32x32xf32, #tpu.memory_space<vmem>>, %arg3: memref<32x1xf32, #tpu.memory_space<vmem>>, %arg4: memref<2x32xf32, #tpu.memory_space<vmem>>, %arg5: memref<2x1xf32, #tpu.memory_space<vmem>>, %arg6: memref<2x8xf32, #tpu.memory_space<vmem>>) attributes {dimension_semantics = [#tpu.dimension_semantics<parallel>], iteration_bounds = array<i64: 1>, scalar_prefetch = 0 : i64, scratch_operands = 0 : i64, tpu.core_type = #tpu.core_type<tc>, window_params = [{transform_indices = @transform_0, window_bounds = array<i64: 8, 32>}, {pipeline_mode = #tpu.pipeline_mode<synchronous>, transform_indices = @transform_1, window_bounds = array<i64: 32, 32>}, {pipeline_mode = #tpu.pipeline_mode<synchronous>, transform_indices = @transform_2, window_bounds = array<i64: 32, 1>}, {pipeline_mode = #tpu.pipeline_mode<synchronous>, transform_indices = @transform_3, window_bounds = array<i64: 2, 32>}, {pipeline_mode = #tpu.pipeline_mode<synchronous>, transform_indices = @transform_4, window_bounds = array<i64: 2, 1>}, {transform_indices = @transform_5, window_bounds = array<i64: 2, 8>}]} {
    %c0 = arith.constant 0 : index
    %c0_0 = arith.constant 0 : index
    %0 = vector.load %arg1[%c0, %c0_0] : memref<8x32xf32, #tpu.memory_space<vmem>>, vector<8x32xf32>
    %c0_1 = arith.constant 0 : index
    %c0_2 = arith.constant 0 : index
    %1 = vector.load %arg2[%c0_1, %c0_2] : memref<32x32xf32, #tpu.memory_space<vmem>>, vector<32x32xf32>
    %cst = arith.constant dense<0.000000e+00> : vector<32x8xf32>
    %2 = tpu.matmul %1, %0, %cst {dimension_numbers = #tpu.dot_dimension_numbers<[1], [1], [0], [0], [0, 0, 1, 0], [], []>} : vector<32x32xf32>, vector<8x32xf32>, vector<32x8xf32> -> vector<32x8xf32>
    %c0_3 = arith.constant 0 : index
    %c0_4 = arith.constant 0 : index
    %3 = vector.load %arg3[%c0_3, %c0_4] : memref<32x1xf32, #tpu.memory_space<vmem>>, vector<32x1xf32>
    %4 = vector.broadcast %3 : vector<32x1xf32> to vector<32x8xf32>
    %5 = arith.addf %2, %4 : vector<32x8xf32>
    %cst_5 = arith.constant 0.000000e+00 : f32
    %6 = vector.broadcast %cst_5 : f32 to vector<32x8xf32>
    %7 = arith.maximumf %5, %6 : vector<32x8xf32>
    %c0_6 = arith.constant 0 : index
    %c0_7 = arith.constant 0 : index
    %8 = vector.load %arg4[%c0_6, %c0_7] : memref<2x32xf32, #tpu.memory_space<vmem>>, vector<2x32xf32>
    %cst_8 = arith.constant dense<0.000000e+00> : vector<2x8xf32>
    %9 = tpu.matmul %8, %7, %cst_8 {dimension_numbers = #tpu.dot_dimension_numbers<[1], [0], [0], [1], [0, 0, 1, 1], [], []>} : vector<2x32xf32>, vector<32x8xf32>, vector<2x8xf32> -> vector<2x8xf32>
    %c0_9 = arith.constant 0 : index
    %c0_10 = arith.constant 0 : index
    %10 = vector.load %arg5[%c0_9, %c0_10] : memref<2x1xf32, #tpu.memory_space<vmem>>, vector<2x1xf32>
    %11 = vector.broadcast %10 : vector<2x1xf32> to vector<2x8xf32>
    %12 = arith.addf %9, %11 : vector<2x8xf32>
    %c0_11 = arith.constant 0 : index
    %c0_12 = arith.constant 0 : index
    %13 = vector.load %arg6[%c0_11, %c0_12] : memref<2x8xf32, #tpu.memory_space<vmem>>, vector<2x8xf32>
    tpu.vector_store %arg6[%c0_11, %c0_12], %12 {strides = array<i32>} : memref<2x8xf32, #tpu.memory_space<vmem>>, vector<2x8xf32>,
    return
  }
  func.func @transform_0(%arg0: i32) -> (i32, i32) {
    %c0_i32 = arith.constant 0 : i32
    %c0_i32_0 = arith.constant 0 : i32
    return %arg0, %c0_i32 : i32, i32
  }
  func.func @transform_1(%arg0: i32) -> (i32, i32) {
    %c0_i32 = arith.constant 0 : i32
    %c0_i32_0 = arith.constant 0 : i32
    %c0_i32_1 = arith.constant 0 : i32
    return %c0_i32, %c0_i32_0 : i32, i32
  }
  func.func @transform_2(%arg0: i32) -> (i32, i32) {
    %c0_i32 = arith.constant 0 : i32
    %c0_i32_0 = arith.constant 0 : i32
    %c0_i32_1 = arith.constant 0 : i32
    return %c0_i32, %c0_i32_0 : i32, i32
  }
  func.func @transform_3(%arg0: i32) -> (i32, i32) {
    %c0_i32 = arith.constant 0 : i32
    %c0_i32_0 = arith.constant 0 : i32
    %c0_i32_1 = arith.constant 0 : i32
    return %c0_i32, %c0_i32_0 : i32, i32
  }
  func.func @transform_4(%arg0: i32) -> (i32, i32) {
    %c0_i32 = arith.constant 0 : i32
    %c0_i32_0 = arith.constant 0 : i32
    %c0_i32_1 = arith.constant 0 : i32
    return %c0_i32, %c0_i32_0 : i32, i32
  }
  func.func @transform_5(%arg0: i32) -> (i32, i32) {
    %c0_i32 = arith.constant 0 : i32
    %c0_i32_0 = arith.constant 0 : i32
    return %c0_i32, %arg0 : i32, i32
  }
}

</mosaic_0001>

<bundles_post_ra>
// kernel: tpu_custom_call.1
= control target key start
LH: loop header
LB: loop body
LE: loop exit
PB: predicated region body
PF: predicated region fallthrough
CT: control target
= control target key end

     0   :  { %vm50_vm0 = vcmask 261120   ;;  %v323_v4 = vmov 0   ;;  %s410_s0 = inlined_call_operand.vmem [shape: f32[8,32], index: 0, kind: input, shape index: {}]   ;;  %s411_s1 = inlined_call_operand.vmem [shape: f32[32,32], index: 1, kind: input, shape index: {}]   ;;  %s412_s2 = inlined_call_operand.vmem [shape: f32[32,1], index: 2, kind: input, shape index: {}]   ;;  %s413_s3 = inlined_call_operand.vmem [shape: f32[2,32], index: 3, kind: input, shape index: {}]   ;;  %s414_s4 = inlined_call_operand.vmem [shape: f32[2,1], index: 4, kind: input, shape index: {}]   ;;  %s415_s5 = inlined_call_operand.hbm [shape: f32[2,8], index: 5, kind: output, shape index: {}]  }
   0x1   :  { %v21_v0 = vld [vmem:[%s410_s0] sm:$0xff]  ;;  %v23_v3 = vld [vmem:[%s411_s1 + $0x8] sm:$0xff]  ;;  %297 = vset.pattern.permute.xlu0 %v323_v4  ;;  %v28_v5 = vld [vmem:[%s412_s2 + $0x10] sm:$0xff]  ;;  %298 = vset.pattern.permute.xlu1 %v323_v4 }
   0x2   :  { %v22_v1 = vld [vmem:[%s411_s1] sm:$0xff]  ;;  %267 = vmatprep.subr.msk.mxu0 %vm50_vm0, %v21_v0  ;;  %v24_v6 = vld [vmem:[%s411_s1 + $0x10] sm:$0xff] }
   0x3   :  { %269 = vmatprep.mubr.msk.f32.mxu0 %vm50_vm0, %v22_v1  ;;  %v26_v2 = vld [vmem:[%s412_s2] sm:$0xff]  ;;  %268 = vmatpush3.xpose.msk.msra.mxu0 %vm50_vm0, %v21_v0 }
   0x4   :  { %32 = vperm.xlu0 %297, %v26_v2  }
   0x5   :  { %10 = vsyncpa [#allocation3], 0  ;;  %v27_v7 = vld [vmem:[%s412_s2 + $0x8] sm:$0xff]  ;;  %42 = vperm.xlu1 %298, %v28_v5   ;;  %v29_v8 = vld [vmem:[%s412_s2 + $0x18] sm:$0xff]  ;;  %v324_v11 = vmov 0.0|0.0   ;;  %vm325_vm1 = vmmov 0  }
   0x6   :  { %270 = vmatmul.mubr.msk.f32.vlgmr.msra.gmra.mrb[0].mxu0 %vm50_vm0, %v23_v3  ;;  %v25_v9 = vld [vmem:[%s411_s1 + $0x18] sm:$0xff]  ;;  %v156_v10 = vld [vmem:[%s414_s4] sm:$0x3]  ;;  %286 = vmatprep.subr.bf16.mxu1 %v324_v11  ;;  %v326_v12 = vmov 0.0   ;;  %s327_s4 = smov [#allocation2]   ;;  %vm235_vm2 = vcmask 58368  }
   0x7   :  { %272 = vmatprep.mubr.msk.f32.mxu0 %vm50_vm0, %v24_v6  ;;  %283 = vmatprep.mubr.msk.f32.mxu1 %vm325_vm1, %v326_v12  ;;  %v155_v31 = vld [vmem:[%s413_s3] sm:$0x3]  ;;  %s243_s12 = sshll.u32 %s327_s4, 4  ;;  %s244_s12 = int_to_ptr.vmem [resolvable:$true] %s243_s12 }
   0x8   :  { %37 = vperm.xlu0 %297, %v27_v7   ;;  %s299_s13 = scalar_lea.vmem %s244_s12, 32  ;;  %p304_p1 = scmp.lt.s32.totalorder %s244_s12, %s244_s12 }
   0x9   :  { %47 = vperm.xlu1 %298, %v29_v8   ;;  %p300_p0 = scmp.ne.s32.totalorder %s244_s12, %s299_s13  ;;  %p305_p2 = scmp.lt.s32.totalorder %s299_s13, %s299_s13 }
   0xa   :  { %273 = vmatmul.mubr.msk.f32.gmra.mrb[2].mxu0 %vm50_vm0, %v25_v9 }
   0xb   :  { %p306_p3 = por %p305_p2, %p304_p1 }
   0xc   :  { %159 = vperm.xlu0 %297, %v156_v10  }
   0xd   :  { %p307_p4 = pnand %p306_p3, %p300_p0 }
  0x83   :  { %v33_v13 = vpop.permute.xlu0 %32 }
  0x84   :  { %v43_v14 = vpop.permute.xlu1 %42 }
  0x87   :  { %v38_v15 = vpop.permute.xlu0 %37 }
  0x88   :  { %v48_v21 = vpop.permute.xlu1 %47 }
  0x8b   :  { %v160_v32 = vpop.permute.xlu0 %159 }
  0xd9   :  { %v271_v16 = vpop.f32.mrb[0].mxu0 }
  0xda   :  { %v138_v17 = vadd.f32 %v271_v16, %v38_v15  ;;  %v132_v18 = vpop.f32.mrb[1].mxu0 }
  0xdb   :  { %v133_v19 = vadd.f32 %v132_v18, %v33_v13 }
  0xdc   :  { %v152_v20 = vmax.f32 %v138_v17, 0.0 }
  0xdd   :  { %v151_v22 = vmax.f32 %v133_v19, 0.0  ;;  %v274_v23 = vpop.f32.mrb[2].mxu0 }
  0xde   :  { %v148_v24 = vadd.f32 %v274_v23, %v48_v21  ;;  %v142_v25 = vpop.f32.mrb[3].mxu0 }
  0xdf   :  { %v143_v26 = vadd.f32 %v142_v25, %v43_v14  ;;  %v287_v27 = vpack.c.bf16 %v152_v20, %v151_v22 }
  0xe0   :  { %v154_v28 = vmax.f32 %v148_v24, 0.0 }
  0xe1   :  { %v153_v29 = vmax.f32 %v143_v26, 0.0  ;;  %288 = vmatpush3.bf16.msra.mxu1 %v287_v27 }
  0xe2   :  { %289 = vmatprep.subr.bf16.mxu1 %v324_v11 }
  0xe3   :  { %v290_v30 = vpack.c.bf16 %v154_v28, %v153_v29 }
  0xe5   :  { %291 = vmatpush3.bf16.msra.mxu1 %v290_v30 }
  0xe8   :  { %284 = vmatmul.mubr.msk.f32.vlgmr.msra.gmra.mrb[0].mxu1 %vm50_vm0, %v155_v31 }
 0x1bb   :  { %v231_v33 = vpop.f32.mrb[0].mxu1 }
 0x1bc   :  { %v232_v34 = vadd.f32 %v231_v33, %v160_v32  ;;  %v285_v35 = vpop.f32.mrb[1].mxu1 }
 0x1be   :  { %236 = vst.msk [vmem:[#allocation2] sm:$0x3] %vm235_vm2, %v232_v34 }
 0x1bf   :  { %310 = shalt.err (!%p307_p4)
}
 0x1c0   :  { %s311_s15 = scalar_lea.hbm %s415_s5, 32 }
 0x1c1   :  { %p312_p5 = scmp.ne.s32.totalorder %s415_s5, %s311_s15  ;;  %p315_p6 = scmp.lt.u32.totalorder %s311_s15, %s415_s5 }
 0x1c3   :  { %p317_p7 = pnand %p315_p6, %p312_p5 }
 0x1c5   :  { %320 = shalt.err (!%p317_p7)
}
 0x1c6   :  { %246 = dma.vmem_to_hbm [thread:$0]  %s244_s12, 32, %s415_s5, [#allocation3]  }
 0x1c7   :  { %321 = dma.done.wait [#allocation3], 32  }
 0x1c8   :  { %322 = vsyncadd [#allocation3], 4294967264 }
 0x1c9   :  { %250 = vsyncpa [#allocation3], 1 }

</bundles_post_ra>
